<compile_context>
chip_gen: v7x
topology: tpu7x:2x2x1
jax: 0.10.0
libtpu: 0.0.40
codegen_flags: <defaults>
</compile_context>

<pallas_src>
import functools

import jax
import jax.numpy as jnp
from jax import lax
from jax.experimental import pallas as pl
from jax.experimental.pallas import tpu as pltpu


_EPS = 1e-5           # nn.InstanceNorm2d default eps
_NEG_SLOPE = 0.2      # LeakyReLU slope
_LANE = 128
_SUBLANE = 8
_DEFAULT_HW_TILE = 2048


def _round_up(x, m):
    return (x + m - 1) // m * m


def _vmem_capacity_bytes():
    """Physical VMEM per TensorCore (gen-aware); conservative fallback."""
    try:
        cap = int(pltpu.get_tpu_info().vmem_capacity_bytes)
        if cap > 0:
            return cap
    except Exception:
        pass
    return 64 * 1024 * 1024   # v7x per-TC size: a safe lower bound everywhere


_VMEM_CAP = _vmem_capacity_bytes()
# Explicit scoped-VMEM limit (v5e's scoped default is only 16 MiB) and the
# per-sample working-set budget that keeps us on the single-pass fused kernel.
#   v5e/v6e (128 MiB): limit 96 MiB, fused budget 48 MiB.
#   v7x      (64 MiB): limit 48 MiB, fused budget 24 MiB.
_VMEM_LIMIT = min(3 * _VMEM_CAP // 4, 100 * 1024 * 1024)
_FUSED_VMEM_BUDGET = min(3 * _VMEM_CAP // 8, 48 * 1024 * 1024)


# ----------------------------------------------------------------------------
# Kernels
# ----------------------------------------------------------------------------
def _direct_fused_kernel(x_ref, w_ref, m_ref, o_ref, *, offsets, hw_valid):
    """Per-sample direct conv (stride=1) + InstanceNorm + LeakyReLU.

    x_ref: (1, Cinp, Lxp)   flattened zero-padded input frame (row stride Wp)
    w_ref: (K*K, Cout, Cinp)
    m_ref: (1, Lop)         1.0 on valid output columns of the frame, else 0.0
    o_ref: (1, Cout, Lop)   lane-dense output frame (row stride Wp)
    """
    cout, lop = o_ref.shape[1], o_ref.shape[2]
    acc = jnp.zeros((cout, lop), jnp.float32)
    # K*K shifted matmuls accumulated on the MXU in f32.  The lane-shifted
    # slices are in-VMEM relayouts only -- no extra HBM traffic (no im2col).
    for t, off in enumerate(offsets):
        acc = acc + jnp.dot(w_ref[t], x_ref[0, :, off:off + lop],
                            preferred_element_type=jnp.float32)

    mask = m_ref[...]                                   # (1, Lop)
    inv_hw = 1.0 / hw_valid
    # Two-pass (centered) statistics: stable vs. E[y^2]-mean^2 cancellation.
    # (Deliberately trades one extra in-VMEM pass of y for accuracy.)
    mean = jnp.sum(acc * mask, axis=1, keepdims=True) * inv_hw     # (Cout, 1)
    d = acc - mean
    dm = d * mask
    var = jnp.sum(dm * dm, axis=1, keepdims=True) * inv_hw
    yn = d * lax.rsqrt(var + _EPS)
    o_ref[0] = jnp.where(yn >= 0, yn, _NEG_SLOPE * yn).astype(o_ref.dtype)


def _conv_stats_kernel(p_ref, w_ref, y_ref, sum_ref, ssq_ref):
    """HW-tiled im2col conv; accumulates per-channel sum / sumsq across tiles.

    p_ref: (1, CKKp, T)  w_ref: (Cout, CKKp)
    y_ref: (1, Cout, T)  (compute dtype, bf16 by default)
    sum_ref / ssq_ref: (1, Cout, 1) f32, resident across the HW grid axis.
    """
    @pl.when(pl.program_id(1) == 0)
    def _():
        sum_ref[...] = jnp.zeros_like(sum_ref)
        ssq_ref[...] = jnp.zeros_like(ssq_ref)

    y = jnp.dot(w_ref[...], p_ref[0], preferred_element_type=jnp.float32)
    y_ref[0] = y.astype(y_ref.dtype)
    sum_ref[0] += jnp.sum(y, axis=1, keepdims=True)
    ssq_ref[0] += jnp.sum(y * y, axis=1, keepdims=True)


def _norm_act_kernel(y_ref, st_ref, o_ref):
    """Normalize + LeakyReLU. y_ref/o_ref: (1, Cout, T); st_ref: (1, Cout, 2)."""
    y = y_ref[0].astype(jnp.float32)
    yn = (y - st_ref[0, :, 0:1]) * st_ref[0, :, 1:2]
    o_ref[0] = jnp.where(yn >= 0, yn, _NEG_SLOPE * yn).astype(o_ref.dtype)


# ----------------------------------------------------------------------------
# Host-side helpers
# ----------------------------------------------------------------------------
def _im2col(x, kernel_size, stride, padding, dilation, hw_multiple, ckk_multiple):
    """x: (N, C, H, W) -> zero-padded patches (N, CKKp, HWp), plus (Ho, Wo)."""
    n, c, h, w = x.shape
    k = kernel_size
    xp = jnp.pad(x, ((0, 0), (0, 0), (padding, padding), (padding, padding)))
    ho = (h + 2 * padding - dilation * (k - 1) - 1) // stride + 1
    wo = (w + 2 * padding - dilation * (k - 1) - 1) // stride + 1
    cols = []
    for ki in range(k):
        for kj in range(k):
            hi = ki * dilation
            wi = kj * dilation
            cols.append(
                xp[:, :, hi:hi + (ho - 1) * stride + 1:stride,
                         wi:wi + (wo - 1) * stride + 1:stride])   # (N, C, Ho, Wo)
    p = jnp.stack(cols, axis=2)                  # (N, C, K*K, Ho, Wo)
    p = p.reshape(n, c * k * k, ho * wo)         # index order: c*K*K + ki*K + kj
    hw, ckk = ho * wo, c * k * k
    hwp = _round_up(hw, hw_multiple)
    ckkp = _round_up(ckk, ckk_multiple)
    p = jnp.pad(p, ((0, 0), (0, ckkp - ckk), (0, hwp - hw)))
    return p, ho, wo


# ----------------------------------------------------------------------------
# Wrapper
# ----------------------------------------------------------------------------
@functools.partial(jax.jit, static_argnames=("kernel_size", "stride", "padding",
                                             "dilation", "compute_dtype",
                                             "hw_tile"))
def conv2d_block(x, weight, bias=None, *, kernel_size, stride, padding,
                 dilation=1, compute_dtype=jnp.bfloat16, hw_tile=None):
    """Conv2dBlock forward (norm='in', activation='lrelu', pad_type='zero').

    x: (N, C_in, H, W); weight: (C_out, C_in, K, K).  `bias` is accepted but
    unused: a per-channel constant added before an affine-free InstanceNorm is
    exactly cancelled by the mean subtraction (numerically exact to drop).
    compute_dtype=bfloat16 (default) halves the dominant HBM read stream; pass
    jnp.float32 for exact conv inputs.  hw_tile forces the tiled fallback.
    """
    del bias
    n, c_in, h, w = x.shape
    c_out = weight.shape[0]
    k = kernel_size
    itemsize = jnp.dtype(compute_dtype).itemsize

    ho = (h + 2 * padding - dilation * (k - 1) - 1) // stride + 1
    wo = (w + 2 * padding - dilation * (k - 1) - 1) // stride + 1
    hw = ho * wo

    # ---- Path A: direct (no-im2col) fused per-sample kernel, stride == 1 ----
    if stride == 1 and hw_tile is None:
        hp, wp = h + 2 * padding, w + 2 * padding
        cinp = _round_up(c_in, _SUBLANE)
        lop = _round_up(ho * wp, _LANE)                    # output frame cols
        max_off = dilation * (k - 1) * (wp + 1)
        lxp = _round_up(lop + max_off, _LANE)              # input frame cols
        # Rough per-sample VMEM working set (double-buffered blocks + temps).
        est = (2 * cinp * lxp * itemsize
               + 6 * c_out * lop * 4
               + 2 * cinp * lop * itemsize)
        if est <= _FUSED_VMEM_BUDGET:
            xp = jnp.pad(x, ((0, 0), (0, 0),
                             (padding, padding), (padding, padding)))
            xf = xp.reshape(n, c_in, hp * wp)
            xf = jnp.pad(xf, ((0, 0), (0, cinp - c_in),
                              (0, lxp - hp * wp))).astype(compute_dtype)
            wt = weight.transpose(2, 3, 0, 1).reshape(k * k, c_out, c_in)
            wt = jnp.pad(wt, ((0, 0), (0, 0),
                              (0, cinp - c_in))).astype(compute_dtype)
            # Valid-column mask of the output frame (garbage columns are the
            # Wp-Wo right-pad of each row and the tail past Ho*Wp).
            col = jnp.arange(lop, dtype=jnp.int32)
            mask = (((col % wp) < wo) & (col < ho * wp))
            mask = mask.astype(jnp.float32).reshape(1, lop)
            offsets = tuple(ki * dilation * wp + kj * dilation
                            for ki in range(k) for kj in range(k))

            out = pl.pallas_call(
                functools.partial(_direct_fused_kernel,
                                  offsets=offsets, hw_valid=hw),
                out_shape=jax.ShapeDtypeStruct((n, c_out, lop), jnp.float32),
                grid_spec=pltpu.PrefetchScalarGridSpec(
                    num_scalar_prefetch=0,
                    grid=(n,),
                    in_specs=[
                        pl.BlockSpec((1, cinp, lxp), lambda i: (i, 0, 0)),
                        pl.BlockSpec((k * k, c_out, cinp), lambda i: (0, 0, 0)),
                        pl.BlockSpec((1, lop), lambda i: (0, 0)),
                    ],
                    out_specs=pl.BlockSpec((1, c_out, lop),
                                           lambda i: (i, 0, 0)),
                ),
                compiler_params=pltpu.CompilerParams(
                    dimension_semantics=("parallel",),
                    vmem_limit_bytes=_VMEM_LIMIT),
            )(xf, wt, mask)
            # Frame (row stride Wp) -> (Ho, Wo).  Single XLA unpad pass; the
            # frame overhead is only the Wp/Wo extra columns.
            out = out[:, :, :ho * wp].reshape(n, c_out, ho, wp)
            return out[:, :, :, :wo]

    # ---- Path B: im2col fallback (stride>1 / frame too big for fused VMEM) --
    # TODO(synk): halo-tiled direct conv here would remove the K^2 read
    # inflation from this fallback as well.
    ckk = c_in * k * k
    ckk_mult = 16 if compute_dtype == jnp.bfloat16 else _SUBLANE
    ckkp = _round_up(ckk, ckk_mult)

    tile = hw_tile if hw_tile is not None else _DEFAULT_HW_TILE
    tile = min(_round_up(tile, _LANE), _round_up(hw, _LANE))

    patches, ho, wo = _im2col(x, k, stride, padding, dilation,
                              hw_multiple=tile, ckk_multiple=ckk_mult)
    patches = patches.astype(compute_dtype)
    hwp = patches.shape[-1]
    num_tiles = hwp // tile

    w2d = weight.reshape(c_out, ckk)
    w2d = jnp.pad(w2d, ((0, 0), (0, ckkp - ckk))).astype(compute_dtype)

    # Pass 1: conv (lane-dense) + accumulated per-channel sum / sum-of-squares.
    # y is stored in the compute dtype (bf16 by default) to halve the extra
    # intermediate HBM round-trip; stats are accumulated in f32 before the cast.
    y, ysum, yssq = pl.pallas_call(
        _conv_stats_kernel,
        out_shape=(
            jax.ShapeDtypeStruct((n, c_out, hwp), compute_dtype),
            jax.ShapeDtypeStruct((n, c_out, 1), jnp.float32),
            jax.ShapeDtypeStruct((n, c_out, 1), jnp.float32),
        ),
        grid_spec=pltpu.PrefetchScalarGridSpec(
            num_scalar_prefetch=0,
            grid=(n, num_tiles),
            in_specs=[
                pl.BlockSpec((1, ckkp, tile), lambda i, j: (i, 0, j)),
                pl.BlockSpec((c_out, ckkp), lambda i, j: (0, 0)),
            ],
            out_specs=(
                pl.BlockSpec((1, c_out, tile), lambda i, j: (i, 0, j)),
                pl.BlockSpec((1, c_out, 1), lambda i, j: (i, 0, 0)),
                pl.BlockSpec((1, c_out, 1), lambda i, j: (i, 0, 0)),
            ),
        ),
        compiler_params=pltpu.CompilerParams(
            dimension_semantics=("parallel", "arbitrary"),
            vmem_limit_bytes=_VMEM_LIMIT),
    )(patches, w2d)

    # Tiny host-side finalize (padded HW columns are exact zeros, so dividing
    # by the valid count is exact); pack mean/rstd into one array for pass 2.
    inv_hw = 1.0 / hw
    mean = ysum * inv_hw
    var = jnp.maximum(yssq * inv_hw - mean * mean, 0.0)
    rstd = lax.rsqrt(var + _EPS)
    stats = jnp.concatenate([mean, rstd], axis=-1)          # (N, Cout, 2)

    # Pass 2: normalize + LeakyReLU, fully parallel grid.
    out = pl.pallas_call(
        _norm_act_kernel,
        out_shape=jax.ShapeDtypeStruct((n, c_out, hwp), jnp.float32),
        grid_spec=pltpu.PrefetchScalarGridSpec(
            num_scalar_prefetch=0,
            grid=(n, num_tiles),
            in_specs=[
                pl.BlockSpec((1, c_out, tile), lambda i, j: (i, 0, j)),
                pl.BlockSpec((1, c_out, 2), lambda i, j: (i, 0, 0)),
            ],
            out_specs=pl.BlockSpec((1, c_out, tile), lambda i, j: (i, 0, j)),
        ),
        compiler_params=pltpu.CompilerParams(
            dimension_semantics=("parallel", "parallel"),
            vmem_limit_bytes=_VMEM_LIMIT),
    )(y, stats)

    # (N, Cout, HWp) -> (N, Cout, Ho, Wo); a no-op when HW is a tile multiple.
    return out[:, :, :hw].reshape(n, c_out, ho, wo)


# ----------------------------------------------------------------------------
# Pure-JAX reference (includes the conv bias, proving its exact cancellation)
# ----------------------------------------------------------------------------
def _reference(x, weight, bias, *, kernel_size, stride, padding, dilation=1):
    y = lax.conv_general_dilated(
        x, weight,
        window_strides=(stride, stride),
        padding=[(padding, padding), (padding, padding)],
        rhs_dilation=(dilation, dilation),
        dimension_numbers=("NCHW", "OIHW", "NCHW"),
    ) + bias.reshape(1, -1, 1, 1)
    mean = jnp.mean(y, axis=(2, 3), keepdims=True)
    var = jnp.mean((y - mean) ** 2, axis=(2, 3), keepdims=True)
    y = (y - mean) * lax.rsqrt(var + _EPS)
    return jnp.where(y >= 0, y, _NEG_SLOPE * y)


if __name__ == "__main__":
    # Conv2dBlock(input_dim=4, output_dim=8, kernel_size=3, stride=1, padding=1)
    N, C_IN, H, W = 2, 4, 16, 16
    C_OUT, K, PAD = 8, 3, 1

    key = jax.random.PRNGKey(0)
    kx, kw, kb = jax.random.split(key, 3)
    x = jax.random.normal(kx, (N, C_IN, H, W), dtype=jnp.float32)
    weight = 0.1 * jax.random.normal(kw, (C_OUT, C_IN, K, K), dtype=jnp.float32)
    bias = 0.1 * jax.random.normal(kb, (C_OUT,), dtype=jnp.float32)

    ref = _reference(x, weight, bias, kernel_size=K, stride=1, padding=PAD)

    # 1) Direct (no-im2col) fused path, f32 MXU inputs: exact path.
    out = jax.block_until_ready(conv2d_block(
        x, weight, bias, kernel_size=K, stride=1, padding=PAD,
        compute_dtype=jnp.float32))
    assert out.shape == (N, C_OUT, H, W), out.shape
    assert jnp.allclose(out, ref, atol=1e-4, rtol=1e-4), \
        float(jnp.max(jnp.abs(out - ref)))

    # 2) Direct fused path, default bf16 MXU inputs (f32 accumulation).
    out_bf16 = jax.block_until_ready(conv2d_block(
        x, weight, bias, kernel_size=K, stride=1, padding=PAD))
    assert jnp.allclose(out_bf16, ref, atol=5e-2, rtol=5e-2), \
        float(jnp.max(jnp.abs(out_bf16 - ref)))

    # 3) Forced HW-tiled im2col fallback (f32), exercises tiled statistics.
    out_tiled = jax.block_until_ready(conv2d_block(
        x, weight, bias, kernel_size=K, stride=1, padding=PAD,
        compute_dtype=jnp.float32, hw_tile=128))
    assert jnp.allclose(out_tiled, ref, atol=1e-4, rtol=1e-4), \
        float(jnp.max(jnp.abs(out_tiled - ref)))

    # 4) Forced fallback with bf16 compute + bf16 intermediate y.
    out_tiled_bf16 = jax.block_until_ready(conv2d_block(
        x, weight, bias, kernel_size=K, stride=1, padding=PAD, hw_tile=128))
    assert jnp.allclose(out_tiled_bf16, ref, atol=5e-2, rtol=5e-2), \
        float(jnp.max(jnp.abs(out_tiled_bf16 - ref)))

    # 5) stride=2 goes through the fallback path (f32).
    ref_s2 = _reference(x, weight, bias, kernel_size=K, stride=2, padding=PAD)
    out_s2 = jax.block_until_ready(conv2d_block(
        x, weight, bias, kernel_size=K, stride=2, padding=PAD,
        compute_dtype=jnp.float32))
    assert out_s2.shape == ref_s2.shape, (out_s2.shape, ref_s2.shape)
    assert jnp.allclose(out_s2, ref_s2, atol=1e-4, rtol=1e-4), \
        float(jnp.max(jnp.abs(out_s2 - ref_s2)))

    print("KERNEL_OK")
</pallas_src>

<mosaic_0001>
module attributes {stable_mosaic.version = 11 : i64} {
  func.func @_direct_fused_kernel(%arg0: i32, %arg1: memref<1x8x512xf32, #tpu.memory_space<vmem>>, %arg2: memref<9x8x8xf32, #tpu.memory_space<vmem>>, %arg3: memref<1x384xf32, #tpu.memory_space<vmem>>, %arg4: memref<1x8x384xf32, #tpu.memory_space<vmem>>) attributes {dimension_semantics = [#tpu.dimension_semantics<parallel>], iteration_bounds = array<i64: 2>, scalar_prefetch = 0 : i64, scratch_operands = 0 : i64, tpu.core_type = #tpu.core_type<tc>, window_params = [{transform_indices = @transform_0, window_bounds = array<i64: 1, 8, 512>}, {pipeline_mode = #tpu.pipeline_mode<synchronous>, transform_indices = @transform_1, window_bounds = array<i64: 9, 8, 8>}, {pipeline_mode = #tpu.pipeline_mode<synchronous>, transform_indices = @transform_2, window_bounds = array<i64: 1, 384>}, {transform_indices = @transform_3, window_bounds = array<i64: 1, 8, 384>}]} {
    %cst = arith.constant 0.000000e+00 : f32
    %0 = vector.broadcast %cst : f32 to vector<8x384xf32>
    %c0 = arith.constant 0 : index
    %c0_0 = arith.constant 0 : index
    %c0_1 = arith.constant 0 : index
    %1 = vector.load %arg2[%c0, %c0_0, %c0_1] : memref<9x8x8xf32, #tpu.memory_space<vmem>>, vector<1x8x8xf32>
    %2 = vector.shape_cast %1 : vector<1x8x8xf32> to vector<8x8xf32>
    %c0_2 = arith.constant 0 : index
    %c0_3 = arith.constant 0 : index
    %c0_4 = arith.constant 0 : index
    %3 = vector.load %arg1[%c0_2, %c0_3, %c0_4] : memref<1x8x512xf32, #tpu.memory_space<vmem>>, vector<1x8x384xf32>
    %4 = vector.shape_cast %3 : vector<1x8x384xf32> to vector<8x384xf32>
    %cst_5 = arith.constant dense<0.000000e+00> : vector<8x384xf32>
    %5 = tpu.matmul %2, %4, %cst_5 {dimension_numbers = #tpu.dot_dimension_numbers<[1], [0], [0], [1], [0, 0, 1, 1], [], []>} : vector<8x8xf32>, vector<8x384xf32>, vector<8x384xf32> -> vector<8x384xf32>
    %6 = arith.addf %0, %5 : vector<8x384xf32>
    %c1 = arith.constant 1 : index
    %c0_6 = arith.constant 0 : index
    %c0_7 = arith.constant 0 : index
    %7 = vector.load %arg2[%c1, %c0_6, %c0_7] : memref<9x8x8xf32, #tpu.memory_space<vmem>>, vector<1x8x8xf32>
    %8 = vector.shape_cast %7 : vector<1x8x8xf32> to vector<8x8xf32>
    %c0_8 = arith.constant 0 : index
    %c0_9 = arith.constant 0 : index
    %c1_10 = arith.constant 1 : index
    %9 = vector.load %arg1[%c0_8, %c0_9, %c1_10] : memref<1x8x512xf32, #tpu.memory_space<vmem>>, vector<1x8x384xf32>
    %10 = vector.shape_cast %9 : vector<1x8x384xf32> to vector<8x384xf32>
    %cst_11 = arith.constant dense<0.000000e+00> : vector<8x384xf32>
    %11 = tpu.matmul %8, %10, %cst_11 {dimension_numbers = #tpu.dot_dimension_numbers<[1], [0], [0], [1], [0, 0, 1, 1], [], []>} : vector<8x8xf32>, vector<8x384xf32>, vector<8x384xf32> -> vector<8x384xf32>
    %12 = arith.addf %6, %11 : vector<8x384xf32>
    %c2 = arith.constant 2 : index
    %c0_12 = arith.constant 0 : index
    %c0_13 = arith.constant 0 : index
    %13 = vector.load %arg2[%c2, %c0_12, %c0_13] : memref<9x8x8xf32, #tpu.memory_space<vmem>>, vector<1x8x8xf32>
    %14 = vector.shape_cast %13 : vector<1x8x8xf32> to vector<8x8xf32>
    %c0_14 = arith.constant 0 : index
    %c0_15 = arith.constant 0 : index
    %c2_16 = arith.constant 2 : index
    %15 = vector.load %arg1[%c0_14, %c0_15, %c2_16] : memref<1x8x512xf32, #tpu.memory_space<vmem>>, vector<1x8x384xf32>
    %16 = vector.shape_cast %15 : vector<1x8x384xf32> to vector<8x384xf32>
    %cst_17 = arith.constant dense<0.000000e+00> : vector<8x384xf32>
    %17 = tpu.matmul %14, %16, %cst_17 {dimension_numbers = #tpu.dot_dimension_numbers<[1], [0], [0], [1], [0, 0, 1, 1], [], []>} : vector<8x8xf32>, vector<8x384xf32>, vector<8x384xf32> -> vector<8x384xf32>
    %18 = arith.addf %12, %17 : vector<8x384xf32>
    %c3 = arith.constant 3 : index
    %c0_18 = arith.constant 0 : index
    %c0_19 = arith.constant 0 : index
    %19 = vector.load %arg2[%c3, %c0_18, %c0_19] : memref<9x8x8xf32, #tpu.memory_space<vmem>>, vector<1x8x8xf32>
    %20 = vector.shape_cast %19 : vector<1x8x8xf32> to vector<8x8xf32>
    %c0_20 = arith.constant 0 : index
    %c0_21 = arith.constant 0 : index
    %c18 = arith.constant 18 : index
    %21 = vector.load %arg1[%c0_20, %c0_21, %c18] : memref<1x8x512xf32, #tpu.memory_space<vmem>>, vector<1x8x384xf32>
    %22 = vector.shape_cast %21 : vector<1x8x384xf32> to vector<8x384xf32>
    %cst_22 = arith.constant dense<0.000000e+00> : vector<8x384xf32>
    %23 = tpu.matmul %20, %22, %cst_22 {dimension_numbers = #tpu.dot_dimension_numbers<[1], [0], [0], [1], [0, 0, 1, 1], [], []>} : vector<8x8xf32>, vector<8x384xf32>, vector<8x384xf32> -> vector<8x384xf32>
    %24 = arith.addf %18, %23 : vector<8x384xf32>
    %c4 = arith.constant 4 : index
    %c0_23 = arith.constant 0 : index
    %c0_24 = arith.constant 0 : index
    %25 = vector.load %arg2[%c4, %c0_23, %c0_24] : memref<9x8x8xf32, #tpu.memory_space<vmem>>, vector<1x8x8xf32>
    %26 = vector.shape_cast %25 : vector<1x8x8xf32> to vector<8x8xf32>
    %c0_25 = arith.constant 0 : index
    %c0_26 = arith.constant 0 : index
    %c19 = arith.constant 19 : index
    %27 = vector.load %arg1[%c0_25, %c0_26, %c19] : memref<1x8x512xf32, #tpu.memory_space<vmem>>, vector<1x8x384xf32>
    %28 = vector.shape_cast %27 : vector<1x8x384xf32> to vector<8x384xf32>
    %cst_27 = arith.constant dense<0.000000e+00> : vector<8x384xf32>
    %29 = tpu.matmul %26, %28, %cst_27 {dimension_numbers = #tpu.dot_dimension_numbers<[1], [0], [0], [1], [0, 0, 1, 1], [], []>} : vector<8x8xf32>, vector<8x384xf32>, vector<8x384xf32> -> vector<8x384xf32>
    %30 = arith.addf %24, %29 : vector<8x384xf32>
    %c5 = arith.constant 5 : index
    %c0_28 = arith.constant 0 : index
    %c0_29 = arith.constant 0 : index
    %31 = vector.load %arg2[%c5, %c0_28, %c0_29] : memref<9x8x8xf32, #tpu.memory_space<vmem>>, vector<1x8x8xf32>
    %32 = vector.shape_cast %31 : vector<1x8x8xf32> to vector<8x8xf32>
    %c0_30 = arith.constant 0 : index
    %c0_31 = arith.constant 0 : index
    %c20 = arith.constant 20 : index
    %33 = vector.load %arg1[%c0_30, %c0_31, %c20] : memref<1x8x512xf32, #tpu.memory_space<vmem>>, vector<1x8x384xf32>
    %34 = vector.shape_cast %33 : vector<1x8x384xf32> to vector<8x384xf32>
    %cst_32 = arith.constant dense<0.000000e+00> : vector<8x384xf32>
    %35 = tpu.matmul %32, %34, %cst_32 {dimension_numbers = #tpu.dot_dimension_numbers<[1], [0], [0], [1], [0, 0, 1, 1], [], []>} : vector<8x8xf32>, vector<8x384xf32>, vector<8x384xf32> -> vector<8x384xf32>
    %36 = arith.addf %30, %35 : vector<8x384xf32>
    %c6 = arith.constant 6 : index
    %c0_33 = arith.constant 0 : index
    %c0_34 = arith.constant 0 : index
    %37 = vector.load %arg2[%c6, %c0_33, %c0_34] : memref<9x8x8xf32, #tpu.memory_space<vmem>>, vector<1x8x8xf32>
    %38 = vector.shape_cast %37 : vector<1x8x8xf32> to vector<8x8xf32>
    %c0_35 = arith.constant 0 : index
    %c0_36 = arith.constant 0 : index
    %c36 = arith.constant 36 : index
    %39 = vector.load %arg1[%c0_35, %c0_36, %c36] : memref<1x8x512xf32, #tpu.memory_space<vmem>>, vector<1x8x384xf32>
    %40 = vector.shape_cast %39 : vector<1x8x384xf32> to vector<8x384xf32>
    %cst_37 = arith.constant dense<0.000000e+00> : vector<8x384xf32>
    %41 = tpu.matmul %38, %40, %cst_37 {dimension_numbers = #tpu.dot_dimension_numbers<[1], [0], [0], [1], [0, 0, 1, 1], [], []>} : vector<8x8xf32>, vector<8x384xf32>, vector<8x384xf32> -> vector<8x384xf32>
    %42 = arith.addf %36, %41 : vector<8x384xf32>
    %c7 = arith.constant 7 : index
    %c0_38 = arith.constant 0 : index
    %c0_39 = arith.constant 0 : index
    %43 = vector.load %arg2[%c7, %c0_38, %c0_39] : memref<9x8x8xf32, #tpu.memory_space<vmem>>, vector<1x8x8xf32>
    %44 = vector.shape_cast %43 : vector<1x8x8xf32> to vector<8x8xf32>
    %c0_40 = arith.constant 0 : index
    %c0_41 = arith.constant 0 : index
    %c37 = arith.constant 37 : index
    %45 = vector.load %arg1[%c0_40, %c0_41, %c37] : memref<1x8x512xf32, #tpu.memory_space<vmem>>, vector<1x8x384xf32>
    %46 = vector.shape_cast %45 : vector<1x8x384xf32> to vector<8x384xf32>
    %cst_42 = arith.constant dense<0.000000e+00> : vector<8x384xf32>
    %47 = tpu.matmul %44, %46, %cst_42 {dimension_numbers = #tpu.dot_dimension_numbers<[1], [0], [0], [1], [0, 0, 1, 1], [], []>} : vector<8x8xf32>, vector<8x384xf32>, vector<8x384xf32> -> vector<8x384xf32>
    %48 = arith.addf %42, %47 : vector<8x384xf32>
    %c8 = arith.constant 8 : index
    %c0_43 = arith.constant 0 : index
    %c0_44 = arith.constant 0 : index
    %49 = vector.load %arg2[%c8, %c0_43, %c0_44] : memref<9x8x8xf32, #tpu.memory_space<vmem>>, vector<1x8x8xf32>
    %50 = vector.shape_cast %49 : vector<1x8x8xf32> to vector<8x8xf32>
    %c0_45 = arith.constant 0 : index
    %c0_46 = arith.constant 0 : index
    %c38 = arith.constant 38 : index
    %51 = vector.load %arg1[%c0_45, %c0_46, %c38] : memref<1x8x512xf32, #tpu.memory_space<vmem>>, vector<1x8x384xf32>
    %52 = vector.shape_cast %51 : vector<1x8x384xf32> to vector<8x384xf32>
    %cst_47 = arith.constant dense<0.000000e+00> : vector<8x384xf32>
    %53 = tpu.matmul %50, %52, %cst_47 {dimension_numbers = #tpu.dot_dimension_numbers<[1], [0], [0], [1], [0, 0, 1, 1], [], []>} : vector<8x8xf32>, vector<8x384xf32>, vector<8x384xf32> -> vector<8x384xf32>
    %54 = arith.addf %48, %53 : vector<8x384xf32>
    %c0_48 = arith.constant 0 : index
    %c0_49 = arith.constant 0 : index
    %55 = vector.load %arg3[%c0_48, %c0_49] : memref<1x384xf32, #tpu.memory_space<vmem>>, vector<1x384xf32>
    %56 = vector.broadcast %55 : vector<1x384xf32> to vector<8x384xf32>
    %57 = arith.mulf %54, %56 : vector<8x384xf32>
    %cst_50 = arith.constant dense<0.000000e+00> : vector<8xf32>
    %58 = vector.multi_reduction <add>, %57, %cst_50 [1] : vector<8x384xf32> to vector<8xf32>
    %59 = vector.shape_cast %58 : vector<8xf32> to vector<8x1xf32>
    %cst_51 = arith.constant 3.906250e-03 : f32
    %60 = vector.broadcast %cst_51 : f32 to vector<8x1xf32>
    %61 = arith.mulf %59, %60 : vector<8x1xf32>
    %62 = vector.broadcast %61 : vector<8x1xf32> to vector<8x384xf32>
    %63 = arith.subf %54, %62 : vector<8x384xf32>
    %64 = vector.broadcast %55 : vector<1x384xf32> to vector<8x384xf32>
    %65 = arith.mulf %63, %64 : vector<8x384xf32>
    %66 = arith.mulf %65, %65 : vector<8x384xf32>
    %cst_52 = arith.constant dense<0.000000e+00> : vector<8xf32>
    %67 = vector.multi_reduction <add>, %66, %cst_52 [1] : vector<8x384xf32> to vector<8xf32>
    %68 = vector.shape_cast %67 : vector<8xf32> to vector<8x1xf32>
    %cst_53 = arith.constant 3.906250e-03 : f32
    %69 = vector.broadcast %cst_53 : f32 to vector<8x1xf32>
    %70 = arith.mulf %68, %69 : vector<8x1xf32>
    %cst_54 = arith.constant 9.99999974E-6 : f32
    %71 = vector.broadcast %cst_54 : f32 to vector<8x1xf32>
    %72 = arith.addf %70, %71 : vector<8x1xf32>
    %73 = math.rsqrt %72 : vector<8x1xf32>
    %74 = vector.broadcast %73 : vector<8x1xf32> to vector<8x384xf32>
    %75 = arith.mulf %63, %74 : vector<8x384xf32>
    %cst_55 = arith.constant 0.000000e+00 : f32
    %76 = vector.broadcast %cst_55 : f32 to vector<8x384xf32>
    %77 = arith.cmpf oge, %75, %76 : vector<8x384xf32>
    %cst_56 = arith.constant 2.000000e-01 : f32
    %78 = vector.broadcast %cst_56 : f32 to vector<8x384xf32>
    %79 = arith.mulf %78, %75 : vector<8x384xf32>
    %80 = arith.select %77, %75, %79 : vector<8x384xi1>, vector<8x384xf32>
    %c0_57 = arith.constant 0 : index
    %c0_58 = arith.constant 0 : index
    %c0_59 = arith.constant 0 : index
    %81 = vector.load %arg4[%c0_57, %c0_58, %c0_59] : memref<1x8x384xf32, #tpu.memory_space<vmem>>, vector<1x8x384xf32>
    %82 = vector.shape_cast %81 : vector<1x8x384xf32> to vector<8x384xf32>
    %83 = vector.shape_cast %80 : vector<8x384xf32> to vector<1x8x384xf32>
    tpu.vector_store %arg4[%c0_57, %c0_58, %c0_59], %83 {strides = array<i32>} : memref<1x8x384xf32, #tpu.memory_space<vmem>>, vector<1x8x384xf32>,
    return
  }
  func.func @transform_0(%arg0: i32) -> (i32, i32, i32) {
    %c0_i32 = arith.constant 0 : i32
    %c0_i32_0 = arith.constant 0 : i32
    %c0_i32_1 = arith.constant 0 : i32
    return %arg0, %c0_i32, %c0_i32_0 : i32, i32, i32
  }
  func.func @transform_1(%arg0: i32) -> (i32, i32, i32) {
    %c0_i32 = arith.constant 0 : i32
    %c0_i32_0 = arith.constant 0 : i32
    %c0_i32_1 = arith.constant 0 : i32
    %c0_i32_2 = arith.constant 0 : i32
    return %c0_i32, %c0_i32_0, %c0_i32_1 : i32, i32, i32
  }
  func.func @transform_2(%arg0: i32) -> (i32, i32) {
    %c0_i32 = arith.constant 0 : i32
    %c0_i32_0 = arith.constant 0 : i32
    %c0_i32_1 = arith.constant 0 : i32
    return %c0_i32, %c0_i32_0 : i32, i32
  }
  func.func @transform_3(%arg0: i32) -> (i32, i32, i32) {
    %c0_i32 = arith.constant 0 : i32
    %c0_i32_0 = arith.constant 0 : i32
    %c0_i32_1 = arith.constant 0 : i32
    return %arg0, %c0_i32, %c0_i32_0 : i32, i32, i32
  }
}

</mosaic_0001>

<bundles_post_ra>
// kernel: conv2d_block.1
= control target key start
LH: loop header
LB: loop body
LE: loop exit
PB: predicated region body
PF: predicated region fallthrough
CT: control target
= control target key end

     0   :  { %s1939_s12 = smov 0   ;;  %s2065_s0 = inlined_call_operand.vmem [shape: f32[2,8,512], index: 0, kind: input, shape index: {}]   ;;  %s2066_s1 = inlined_call_operand.vmem [shape: f32[9,8,8], index: 1, kind: input, shape index: {}]   ;;  %s2067_s2 = inlined_call_operand.vmem [shape: f32[1,384], index: 2, kind: input, shape index: {}]   ;;  %s2068_s3 = inlined_call_operand.vmem [shape: f32[2,8,384], index: 3, kind: output, shape index: {}]  }
   0x1 LB: > { %s1748_s13 = sadd.s32 4294967295, %s1907_s12   ;;  %p1752_p0 = scmp.ge.s32.totalorder %s1907_s12, 1  ;;  %s1907_s12 = sphi %s1939_s12, %s13_s12  }
   0x2   : > { %p137_p1 = scmp.lt.s32.totalorder %s1907_s12, 3 }
   0x4   : > { %p138_p2 = pnand %p1752_p0, %p137_p1 }
   0x5   : > { %p161_p3 = scmp.lt.s32.totalorder (!%p138_p2), %s1748_s13, 1  ;;  %v1909_v0 = vmov (!%p138_p2), 0.0   ;;  %vm1910_vm0 = vmmov (!%p138_p2), 0   ;;  %s1911_s18 = smov (!%p138_p2), 127   ;;  %vm193_vm1 = vcmask (!%p138_p2), 1039360   ;;  %v1756_v9 = vld [vmem:[%s2066_s1 + $0x8] sm:$0xff] (!%p138_p2) }
   0x6   : > { %141 = sbr.rel (%p138_p2) target bundleno = 740 (0x2e4), region = 32  ;;  %1803 = vmatprep.subr.mxu1 (!%p138_p2), %v1909_v0  ;;  %1805 = vmatprep.mubr.msk.f32.mxu1 (!%p138_p2), %vm1910_vm0, %v1909_v0  ;;  %s1912_s19 = smov (!%p138_p2), 126   ;;  %vm200_vm2 = vcmask (!%p138_p2), 64512   ;;  %vm499_vm3 = vcmask (!%p138_p2), 1031168   ;;  %v171_v18 = vld [vmem:[%s2066_s1] sm:$0xff] (!%p138_p2)  ;;  %vm663_vm4 = vcmask (!%p138_p2), 900096  }
   0x7   : > { %268 = vmatprep.mubr.f32.mxu0 (!%p138_p2), %v1909_v0  ;;  %s1913_s20 = smov (!%p138_p2), 110   ;;  %s1914_s21 = smov (!%p138_p2), 109   ;;  %v1761_v26 = vld [vmem:[%s2066_s1 + $0x10] sm:$0xff] (!%p138_p2)  ;;  %vm827_vm5 = vcmask (!%p138_p2), 891904   ;;  %v1764_v34 = vld [vmem:[%s2066_s1 + $0x18] sm:$0xff] (!%p138_p2)  ;;  %vm991_vm6 = vcmask (!%p138_p2), 883712  }
   0x8   : > { %s1915_s22 = smov (!%p138_p2), 108   ;;  %s1916_s23 = smov (!%p138_p2), 92   ;;  %v1767_v42 = vld [vmem:[%s2066_s1 + $0x20] sm:$0xff] (!%p138_p2)  ;;  %vm1155_vm7 = vcmask (!%p138_p2), 752640   ;;  %v1770_v50 = vld [vmem:[%s2066_s1 + $0x28] sm:$0xff] (!%p138_p2)  ;;  %vm1319_vm8 = vcmask (!%p138_p2), 744448  }
   0x9   : > { %s1917_s24 = smov (!%p138_p2), 91   ;;  %s1918_s25 = smov (!%p138_p2), 90   ;;  %v1773_v58 = vld [vmem:[%s2066_s1 + $0x30] sm:$0xff] (!%p138_p2)  ;;  %vm1483_vm9 = vcmask (!%p138_p2), 736256  }
   0xd   : > { %s2070_s13 = smov (!%p161_p3, %s1748_s13), 1 }
   0xe   : > { %s1784_s14 = sshll.u32 %s2070_s13, 5 }
   0xf   : > { %s165_s17 = scalar_lea.vmem %s2065_s0, %s1784_s14 }
  0x10   : > { %v178_v1 = vld [vmem:[%s165_s17 + $0x8] sm:$0xff]  ;;  %v177_v2 = vld [vmem:[%s165_s17] sm:$0xff]  ;;  %v179_v3 = vld [vmem:[%s165_s17 + $0x10] sm:$0xff] }
  0x11   : > { %187 = vrot.lane.b32.xlu0 %v178_v1, %s1911_s18  ;;  %185 = vrot.lane.b32.xlu1 %v177_v2, %s1911_s18  ;;  %v180_v4 = vld [vmem:[%s165_s17 + $0x18] sm:$0xff] }
  0x15   : > { %189 = vrot.lane.b32.xlu0 %v179_v3, %s1911_s18  ;;  %191 = vrot.lane.b32.xlu1 %v180_v4, %s1911_s18 }
  0x19   : > { %493 = vrot.lane.b32.xlu0 %v178_v1, %s1912_s19  ;;  %495 = vrot.lane.b32.xlu1 %v179_v3, %s1912_s19 }
  0x1d   : > { %491 = vrot.lane.b32.xlu0 %v177_v2, %s1912_s19  ;;  %497 = vrot.lane.b32.xlu1 %v180_v4, %s1912_s19 }
  0x21   : > { %657 = vrot.lane.b32.xlu0 %v178_v1, %s1913_s20  ;;  %659 = vrot.lane.b32.xlu1 %v179_v3, %s1913_s20 }
  0x25   : > { %655 = vrot.lane.b32.xlu0 %v177_v2, %s1913_s20  ;;  %661 = vrot.lane.b32.xlu1 %v180_v4, %s1913_s20 }
  0x29   : > { %821 = vrot.lane.b32.xlu0 %v178_v1, %s1914_s21  ;;  %823 = vrot.lane.b32.xlu1 %v179_v3, %s1914_s21 }
  0x2d   : > { %819 = vrot.lane.b32.xlu0 %v177_v2, %s1914_s21  ;;  %825 = vrot.lane.b32.xlu1 %v180_v4, %s1914_s21  ;;  %s1880_s21 = smul.u32 24, %s2070_s13 }
  0x31   : > { %985 = vrot.lane.b32.xlu0 %v178_v1, %s1915_s22  ;;  %987 = vrot.lane.b32.xlu1 %v179_v3, %s1915_s22 }
  0x35   : > { %983 = vrot.lane.b32.xlu0 %v177_v2, %s1915_s22  ;;  %989 = vrot.lane.b32.xlu1 %v180_v4, %s1915_s22 }
  0x39   : > { %1149 = vrot.lane.b32.xlu0 %v178_v1, %s1916_s23  ;;  %1151 = vrot.lane.b32.xlu1 %v179_v3, %s1916_s23 }
  0x3d   : > { %1147 = vrot.lane.b32.xlu0 %v177_v2, %s1916_s23  ;;  %1153 = vrot.lane.b32.xlu1 %v180_v4, %s1916_s23 }
  0x41   : > { %1313 = vrot.lane.b32.xlu0 %v178_v1, %s1917_s24  ;;  %1315 = vrot.lane.b32.xlu1 %v179_v3, %s1917_s24 }
  0x45   : > { %1311 = vrot.lane.b32.xlu0 %v177_v2, %s1917_s24  ;;  %1317 = vrot.lane.b32.xlu1 %v180_v4, %s1917_s24  ;;  %s170_s24 = scalar_lea.vmem %s2068_s3, %s1880_s21 }
  0x49   : > { %1477 = vrot.lane.b32.xlu0 %v178_v1, %s1918_s25  ;;  %1479 = vrot.lane.b32.xlu1 %v179_v3, %s1918_s25 }
  0x4d   : > { %1475 = vrot.lane.b32.xlu0 %v177_v2, %s1918_s25  ;;  %1481 = vrot.lane.b32.xlu1 %v180_v4, %s1918_s25 }
  0x83   : > { %v188_v5 = vpop.permute.xlu0 %187  ;;  %v186_v6 = vpop.permute.xlu1 %185 }
  0x84   : > { %v194_v12 = vsel %vm193_vm1, %v186_v6, %v188_v5  ;;  %v1779_v6 = vld [vmem:[%s2066_s1 + $0x40] sm:$0xff] }
  0x87   : > { %v190_v7 = vpop.permute.xlu0 %189  ;;  %v192_v8 = vpop.permute.xlu1 %191 }
  0x88   : > { %v195_v10 = vsel %vm193_vm1, %v188_v5, %v190_v7  ;;  %v196_v11 = vsel %vm193_vm1, %v190_v7, %v192_v8  ;;  %v1639_v7 = vlaneseq }
  0x89   : > { %204 = vmatprep.subr.mxu0 %v195_v10  ;;  %1804 = vmatpush3.msra.mxu1 %v196_v11  ;;  %v1637_v10 = vld [vmem:[%s2067_s2] sm:$0x7] }
  0x8a   : > { %205 = vmatpush1.msra.mxu0 %v194_v12  ;;  %1806 = vmatmul.mubr.msk.f32.vlgmr.msra.gmra.mrb[0].mxu1 %vm200_vm2, %v1756_v9  ;;  %v1640_v8 = vshrl.u32 %v1639_v7, 7 }
  0x8b   : > { %v494_v13 = vpop.permute.xlu0 %493  ;;  %1757 = vmatmul.mubr.msk.f32.vlgmr.msra.gmra.mrb[0].mxu0 %vm200_vm2, %v1756_v9  ;;  %348 = vmatprep.subr.mxu0 %v178_v1  ;;  %v496_v14 = vpop.permute.xlu1 %495 }
  0x8c   : > { %349 = vmatpush1.msra.mxu0 %v177_v2  ;;  %1808 = vmatprep.subr.mxu1 %v1909_v0  ;;  %v501_v15 = vsel %vm499_vm3, %v494_v13, %v496_v14  ;;  %v1641_v9 = vsub.s32 0, %v1640_v8  ;;  %v1645_v11 = vsub.s32 1, %v1640_v8  ;;  %v1649_v12 = vsub.s32 2, %v1640_v8 }
  0x8d   : > { %1809 = vmatpush3.msra.mxu1 %v179_v3  ;;  %509 = vmatprep.subr.mxu0 %v501_v15  ;;  %v1776_v3 = vld [vmem:[%s2066_s1 + $0x38] sm:$0xff] }
  0x8e   : > { %1810 = vmatprep.mubr.msk.f32.mxu1 %vm1910_vm0, %v1909_v0  ;;  %412 = vmatprep.mubr.f32.mxu0 %v1909_v0  ;;  %v1650_v15 = vrot.slane %v1637_v10, %v1649_v12 }
  0x8f   : > { %v492_v16 = vpop.permute.xlu0 %491  ;;  %v498_v17 = vpop.permute.xlu1 %497  ;;  %1813 = vmatprep.subr.mxu1 %v1909_v0 }
  0x90   : > { %v502_v19 = vsel %vm499_vm3, %v496_v14, %v498_v17  ;;  %v500_v20 = vsel %vm499_vm3, %v492_v16, %v494_v13  ;;  %v1642_v13 = vrot.slane %v1637_v10, %v1641_v9  ;;  %v1646_v14 = vrot.slane %v1637_v10, %v1645_v11 }
  0x92   : > { %1811 = vmatmul.mubr.msk.f32.vlgmr.msra.gmra.mrb[0].mxu1 %vm200_vm2, %v171_v18 }
  0x93   : > { %v658_v21 = vpop.permute.xlu0 %657  ;;  %1759 = vmatmul.mubr.msk.f32.vlgmr.msra.gmra.mrb[0].mxu0 %vm200_vm2, %v171_v18  ;;  %1814 = vmatpush3.msra.mxu1 %v502_v19  ;;  %v660_v22 = vpop.permute.xlu1 %659 }
  0x94   : > { %510 = vmatpush1.msra.mxu0 %v500_v20  ;;  %v665_v23 = vsel %vm663_vm4, %v658_v21, %v660_v22  ;;  %1815 = vmatprep.mubr.msk.f32.mxu1 %vm1910_vm0, %v1909_v0 }
  0x95   : > { %673 = vmatprep.subr.mxu0 %v665_v23  ;;  %573 = vmatprep.mubr.f32.mxu0 %v1909_v0 }
  0x96   : > { %1818 = vmatprep.subr.mxu1 %v1909_v0 }
  0x97   : > { %v656_v24 = vpop.permute.xlu0 %655  ;;  %v662_v25 = vpop.permute.xlu1 %661 }
  0x98   : > { %v666_v27 = vsel %vm663_vm4, %v660_v22, %v662_v25  ;;  %v664_v28 = vsel %vm663_vm4, %v656_v24, %v658_v21 }
  0x9a   : > { %1816 = vmatmul.mubr.msk.f32.vlgmr.msra.gmra.mrb[0].mxu1 %vm200_vm2, %v1761_v26 }
  0x9b   : > { %v822_v29 = vpop.permute.xlu0 %821  ;;  %1762 = vmatmul.mubr.msk.f32.vlgmr.msra.gmra.mrb[0].mxu0 %vm200_vm2, %v1761_v26  ;;  %1819 = vmatpush3.msra.mxu1 %v666_v27  ;;  %v824_v30 = vpop.permute.xlu1 %823 }
  0x9c   : > { %674 = vmatpush1.msra.mxu0 %v664_v28  ;;  %v829_v31 = vsel %vm827_vm5, %v822_v29, %v824_v30  ;;  %1820 = vmatprep.mubr.msk.f32.mxu1 %vm1910_vm0, %v1909_v0 }
  0x9d   : > { %837 = vmatprep.subr.mxu0 %v829_v31  ;;  %737 = vmatprep.mubr.f32.mxu0 %v1909_v0 }
  0x9e   : > { %1823 = vmatprep.subr.mxu1 %v1909_v0 }
  0x9f   : > { %v820_v32 = vpop.permute.xlu0 %819  ;;  %v826_v33 = vpop.permute.xlu1 %825 }
  0xa0   : > { %v830_v35 = vsel %vm827_vm5, %v824_v30, %v826_v33  ;;  %v828_v36 = vsel %vm827_vm5, %v820_v32, %v822_v29 }
  0xa2   : > { %1821 = vmatmul.mubr.msk.f32.vlgmr.msra.gmra.mrb[0].mxu1 %vm200_vm2, %v1764_v34 }
  0xa3   : > { %v986_v37 = vpop.permute.xlu0 %985  ;;  %1765 = vmatmul.mubr.msk.f32.vlgmr.msra.gmra.mrb[0].mxu0 %vm200_vm2, %v1764_v34  ;;  %1824 = vmatpush3.msra.mxu1 %v830_v35  ;;  %v988_v38 = vpop.permute.xlu1 %987 }
  0xa4   : > { %838 = vmatpush1.msra.mxu0 %v828_v36  ;;  %v993_v39 = vsel %vm991_vm6, %v986_v37, %v988_v38  ;;  %1825 = vmatprep.mubr.msk.f32.mxu1 %vm1910_vm0, %v1909_v0 }
  0xa5   : > { %1001 = vmatprep.subr.mxu0 %v993_v39  ;;  %901 = vmatprep.mubr.f32.mxu0 %v1909_v0 }
  0xa6   : > { %1828 = vmatprep.subr.mxu1 %v1909_v0 }
  0xa7   : > { %v984_v40 = vpop.permute.xlu0 %983  ;;  %v990_v41 = vpop.permute.xlu1 %989 }
  0xa8   : > { %v994_v43 = vsel %vm991_vm6, %v988_v38, %v990_v41  ;;  %v992_v44 = vsel %vm991_vm6, %v984_v40, %v986_v37 }
  0xaa   : > { %1826 = vmatmul.mubr.msk.f32.vlgmr.msra.gmra.mrb[0].mxu1 %vm200_vm2, %v1767_v42 }
  0xab   : > { %v1150_v45 = vpop.permute.xlu0 %1149  ;;  %1768 = vmatmul.mubr.msk.f32.vlgmr.msra.gmra.mrb[0].mxu0 %vm200_vm2, %v1767_v42  ;;  %1829 = vmatpush3.msra.mxu1 %v994_v43  ;;  %v1152_v46 = vpop.permute.xlu1 %1151 }
  0xac   : > { %1002 = vmatpush1.msra.mxu0 %v992_v44  ;;  %v1157_v47 = vsel %vm1155_vm7, %v1150_v45, %v1152_v46  ;;  %1830 = vmatprep.mubr.msk.f32.mxu1 %vm1910_vm0, %v1909_v0 }
  0xad   : > { %1165 = vmatprep.subr.mxu0 %v1157_v47  ;;  %1065 = vmatprep.mubr.f32.mxu0 %v1909_v0 }
  0xae   : > { %1833 = vmatprep.subr.mxu1 %v1909_v0 }
  0xaf   : > { %v1148_v48 = vpop.permute.xlu0 %1147  ;;  %v1154_v49 = vpop.permute.xlu1 %1153 }
  0xb0   : > { %v1158_v51 = vsel %vm1155_vm7, %v1152_v46, %v1154_v49  ;;  %v1156_v52 = vsel %vm1155_vm7, %v1148_v48, %v1150_v45 }
  0xb2   : > { %1831 = vmatmul.mubr.msk.f32.vlgmr.msra.gmra.mrb[0].mxu1 %vm200_vm2, %v1770_v50 }
  0xb3   : > { %v1314_v53 = vpop.permute.xlu0 %1313  ;;  %1771 = vmatmul.mubr.msk.f32.vlgmr.msra.gmra.mrb[0].mxu0 %vm200_vm2, %v1770_v50  ;;  %1834 = vmatpush3.msra.mxu1 %v1158_v51  ;;  %v1316_v54 = vpop.permute.xlu1 %1315 }
  0xb4   : > { %1166 = vmatpush1.msra.mxu0 %v1156_v52  ;;  %v1321_v55 = vsel %vm1319_vm8, %v1314_v53, %v1316_v54  ;;  %1835 = vmatprep.mubr.msk.f32.mxu1 %vm1910_vm0, %v1909_v0 }
  0xb5   : > { %1329 = vmatprep.subr.mxu0 %v1321_v55  ;;  %1229 = vmatprep.mubr.f32.mxu0 %v1909_v0 }
  0xb6   : > { %1838 = vmatprep.subr.mxu1 %v1909_v0 }
  0xb7   : > { %v1312_v56 = vpop.permute.xlu0 %1311  ;;  %v1318_v57 = vpop.permute.xlu1 %1317 }
  0xb8   : > { %v1322_v59 = vsel %vm1319_vm8, %v1316_v54, %v1318_v57  ;;  %v1320_v60 = vsel %vm1319_vm8, %v1312_v56, %v1314_v53 }
  0xba   : > { %1836 = vmatmul.mubr.msk.f32.vlgmr.msra.gmra.mrb[0].mxu1 %vm200_vm2, %v1773_v58 }
  0xbb   : > { %v1478_v61 = vpop.permute.xlu0 %1477  ;;  %1774 = vmatmul.mubr.msk.f32.vlgmr.msra.gmra.mrb[0].mxu0 %vm200_vm2, %v1773_v58  ;;  %1839 = vmatpush3.msra.mxu1 %v1322_v59  ;;  %v1480_v62 = vpop.permute.xlu1 %1479 }
  0xbc   : > { %1330 = vmatpush1.msra.mxu0 %v1320_v60  ;;  %v1485_v63 = vsel %vm1483_vm9, %v1478_v61, %v1480_v62  ;;  %1840 = vmatprep.mubr.msk.f32.mxu1 %vm1910_vm0, %v1909_v0 }
  0xbd   : > { %1493 = vmatprep.subr.mxu0 %v1485_v63  ;;  %1393 = vmatprep.mubr.f32.mxu0 %v1909_v0 }
  0xbe   : > { %1843 = vmatprep.subr.mxu1 %v1909_v0 }
  0xbf   : > { %v1476_v1 = vpop.permute.xlu0 %1475  ;;  %v1482_v2 = vpop.permute.xlu1 %1481 }
  0xc0   : > { %v1486_v4 = vsel %vm1483_vm9, %v1480_v62, %v1482_v2  ;;  %v1484_v5 = vsel %vm1483_vm9, %v1476_v1, %v1478_v61 }
  0xc2   : > { %1841 = vmatmul.mubr.msk.f32.vlgmr.msra.gmra.mrb[0].mxu1 %vm200_vm2, %v1776_v3 }
  0xc3   : > { %1777 = vmatmul.mubr.msk.f32.vlgmr.msra.gmra.mrb[0].mxu0 %vm200_vm2, %v1776_v3  ;;  %1844 = vmatpush3.msra.mxu1 %v1486_v4 }
  0xc4   : > { %1494 = vmatpush1.msra.mxu0 %v1484_v5  ;;  %1845 = vmatprep.mubr.msk.f32.mxu1 %vm1910_vm0, %v1909_v0 }
  0xc5   : > { %1557 = vmatprep.mubr.f32.mxu0 %v1909_v0 }
  0xca   : > { %1846 = vmatmul.mubr.msk.f32.vlgmr.msra.gmra.mrb[0].mxu1 %vm200_vm2, %v1779_v6 }
  0xcb   : > { %1780 = vmatmul.mubr.msk.f32.vlgmr.msra.gmra.mrb[0].mxu0 %vm200_vm2, %v1779_v6 }
 0x19d   : > { %v1630_v0 = vpop.f32.mrb[0].mxu1 }
 0x19e   : > { %v1559_v16 = vpop.f32.mrb[0].mxu0  ;;  %v1847_v17 = vpop.f32.mrb[1].mxu1  ;;  %v1656_v21 = vmul.f32 %v1650_v15, %v1630_v0 }
 0x19f   : > { %v1654_v18 = vmul.f32 %v1642_v13, %v1559_v16  ;;  %v1561_v19 = vpop.f32.mrb[1].mxu0 }
 0x1a0   : > { %v1655_v20 = vmul.f32 %v1646_v14, %v1561_v19 }
 0x1a2   : > { %v1657_v22 = vadd.f32 %v1655_v20, %v1654_v18 }
 0x1a4   : > { %v1658_v23 = vadd.f32 %v1657_v22, %v1656_v21 }
 0x1a6   : > { %1659 = vadd.xlane.f32.xlu0 %v1658_v23 }
 0x233   : > { %v1660_v24 = vpop.xlane.xlu0 %1659 }
 0x234   : > { %v1661_v25 = vmul.f32 0.00390625, %v1660_v24 }
 0x236   : > { %v1662_v26 = vsub.f32 %v1559_v16, %v1661_v25  ;;  %v1663_v27 = vsub.f32 %v1561_v19, %v1661_v25  ;;  %v1664_v28 = vsub.f32 %v1630_v0, %v1661_v25 }
 0x238   : > { %v1665_v29 = vmul.f32 %v1662_v26, %v1642_v13  ;;  %v1666_v30 = vmul.f32 %v1663_v27, %v1646_v14  ;;  %v1667_v31 = vmul.f32 %v1664_v28, %v1650_v15 }
 0x23a   : > { %v1668_v32 = vmul.f32 %v1665_v29, %v1665_v29  ;;  %v1669_v33 = vmul.f32 %v1666_v30, %v1666_v30  ;;  %v1670_v34 = vmul.f32 %v1667_v31, %v1667_v31 }
 0x23c   : > { %v1671_v35 = vadd.f32 %v1669_v33, %v1668_v32 }
 0x23e   : > { %v1672_v36 = vadd.f32 %v1671_v35, %v1670_v34 }
 0x240   : > { %1673 = vadd.xlane.f32.xlu1 %v1672_v36 }
 0x2cd   : > { %v1674_v37 = vpop.xlane.xlu1 %1673 }
 0x2ce   : > { %v1675_v38 = vmul.f32 0.00390625, %v1674_v37 }
 0x2d0   : > { %v1676_v39 = vadd.f32 1e-05, %v1675_v38 }
 0x2d2   : > { %1899 = vrsqrt.f32 %v1676_v39 }
 0x2dc   : > { %v1900_v40 = vpop.eup %1899 }
 0x2dd   : > { %v1678_v41 = vmul.f32 %v1900_v40, %v1662_v26  ;;  %v1679_v42 = vmul.f32 %v1900_v40, %v1663_v27  ;;  %v1680_v43 = vmul.f32 %v1900_v40, %v1664_v28 }
 0x2df   : > { %vm1681_vm10 = vcmp.ge.f32.partialorder %v1678_v41, 0.0  ;;  %vm1682_vm11 = vcmp.ge.f32.partialorder %v1679_v42, 0.0  ;;  %vm1683_vm12 = vcmp.ge.f32.partialorder %v1680_v43, 0.0  ;;  %v1684_v44 = vmul.f32 0.2, %v1678_v41 }
 0x2e0   : > { %v1685_v45 = vmul.f32 0.2, %v1679_v42  ;;  %v1686_v46 = vmul.f32 0.2, %v1680_v43 }
 0x2e1   : > { %v1687_v47 = vsel %vm1681_vm10, %v1678_v41, %v1684_v44 }
 0x2e2   : > { %v1688_v48 = vsel %vm1682_vm11, %v1679_v42, %v1685_v45  ;;  %v1689_v49 = vsel %vm1683_vm12, %v1680_v43, %v1686_v46  ;;  %1690 = vst [vmem:[%s170_s24] sm:$0xff] %v1687_v47 }
 0x2e3   : > { %1691 = vst [vmem:[%s170_s24 + $0x8] sm:$0xff] %v1688_v48  ;;  %1692 = vst [vmem:[%s170_s24 + $0x10] sm:$0xff] %v1689_v49 }
 0x2e4 PF: > { %s13_s12 = sadd.s32 1, %s1907_s12  }
 0x2e5   : > { %p10_p4 = scmp.ge.s32.totalorder %s13_s12, 4  }
 0x2e7   :  { %12 = sbr.rel (!%p10_p4) target bundleno = 1 (0x1), region = 70 }

</bundles_post_ra>
